<compile_context>
chip_gen: v5e
topology: v5e:2x2
jax: 0.10.0
libtpu: 0.0.40
codegen_flags: <defaults>
</compile_context>

<pallas_src>
import functools

import jax
import jax.numpy as jnp
from jax.experimental import pallas as pl
from jax.experimental.pallas import tpu as pltpu


def _round_up(x, m):
    return ((x + m - 1) // m) * m


# --------------------------------------------------------------------------
# Pallas kernel: fused im2col-gather + single GEMM, transposed (lane-dense) out
# --------------------------------------------------------------------------
def _make_conv_kernel(K, dilation, c_in, Wp, Lp):
    # Static lane offset of each filter tap within the flattened (Hp*Wp) axis.
    offsets = [(kh * dilation) * Wp + kw * dilation
               for kh in range(K) for kw in range(K)]

    def kernel(x_ref, w_ref, b_ref, o_ref, patch_ref):
        # x_ref:     (1, Cin, P)       bf16  flattened padded image (+ zero tail)
        # w_ref:     (Cout, K*K*Cin)   bf16  tap-stacked weight matrix
        # b_ref:     (Cout, 1)         f32   bias column
        # o_ref:     (1, Cout, Lp)     f32   dense stride-1 conv, transposed layout
        # patch_ref: (K*K*Cin, Lp)     bf16  VMEM scratch holding all tap slices
        for t, off in enumerate(offsets):
            # Static lane slice of the resident image -> scratch rows for tap t.
            patch_ref[t * c_in:(t + 1) * c_in, :] = x_ref[0, :, off:off + Lp]
        acc = jnp.dot(w_ref[...], patch_ref[...],
                      preferred_element_type=jnp.float32)
        o_ref[0] = acc + b_ref[...]          # f32 epilogue, lane-dense store

    return kernel


# --------------------------------------------------------------------------
# Glue: reflection pad, spectral norm (matches torch forward semantics)
# --------------------------------------------------------------------------
def _reflection_pad_nchw(x, pad):
    if pad == 0:
        return x
    return jnp.pad(x, ((0, 0), (0, 0), (pad, pad), (pad, pad)), mode="reflect")


def _spectral_normalize(weight, u, eps=1e-12):
    """One power-iteration step, as in torch.nn.utils.spectral_norm forward."""
    c_out = weight.shape[0]
    w_mat = weight.reshape(c_out, -1)              # (C_out, C_in*K*K)
    v = w_mat.T @ u
    v = v / (jnp.linalg.norm(v) + eps)
    u_new = w_mat @ v
    u_new = u_new / (jnp.linalg.norm(u_new) + eps)
    sigma = jnp.dot(u_new, w_mat @ v)
    # TODO(synk): updated u is not persisted across calls (torch updates the
    # buffer in-place in training mode); inference-style forward only.
    return weight / sigma


# --------------------------------------------------------------------------
# SNConv forward
# --------------------------------------------------------------------------
def sn_conv_forward(x_nchw, weight, bias, u, *, kernel_size, stride, dilation,
                    use_bias, use_sn):
    K, d, s = kernel_size, dilation, stride
    pad = (K + (K - 1) * (d - 1) - 1) // 2

    w = _spectral_normalize(weight, u) if use_sn else weight
    c_out, c_in = w.shape[0], w.shape[1]

    # Cast to bf16 BEFORE the reflection pad (pad only copies values) so every
    # pre-kernel HBM pass over the input is half width.
    xb = x_nchw.astype(jnp.bfloat16)
    xp = _reflection_pad_nchw(xb, pad)              # (N, Cin, Hp, Wp) — NCHW kept
    N, _, Hp, Wp = xp.shape
    H_full = Hp - d * (K - 1)                       # dense (stride-1) output height
    W_full = Wp - d * (K - 1)                       # dense (stride-1) output width

    L = H_full * Wp                                 # dense output columns per image
    Lp = _round_up(L, 128)                          # lane-aligned output width
    max_off = d * (K - 1) * (Wp + 1)                # largest tap lane offset
    P = _round_up(max_off + Lp, 128)                # lane-aligned flat input width

    # Flatten spatial dims onto the lane axis and add a zero lane-tail.
    xf = xp.reshape(N, c_in, Hp * Wp)
    xf = jnp.pad(xf, ((0, 0), (0, 0), (0, P - Hp * Wp)))

    # weight (Cout, Cin, K, K) -> (Cout, K*K*Cin), tap-major contraction axis
    # (column index = (kh*K + kw)*Cin + c), matching the patch scratch rows.
    w_stack = jnp.transpose(w, (0, 2, 3, 1)).reshape(c_out, K * K * c_in)
    w_stack = w_stack.astype(jnp.bfloat16)
    b_col = bias if use_bias else jnp.zeros((c_out,), jnp.float32)
    b_col = b_col.astype(jnp.float32).reshape(c_out, 1)

    kernel = _make_conv_kernel(K, d, c_in, Wp, Lp)

    cost = pl.CostEstimate(
        flops=2 * N * c_out * (K * K * c_in) * Lp,
        transcendentals=0,
        bytes_accessed=(xf.size * 2 + w_stack.size * 2 + b_col.size * 4
                        + N * c_out * Lp * 4),
    )

    out = pl.pallas_call(
        kernel,
        out_shape=jax.ShapeDtypeStruct((N, c_out, Lp), jnp.float32),
        grid_spec=pltpu.PrefetchScalarGridSpec(
            num_scalar_prefetch=0,
            grid=(N,),
            in_specs=[
                pl.BlockSpec((1, c_in, P), lambda n: (n, 0, 0)),
                pl.BlockSpec((c_out, K * K * c_in), lambda n: (0, 0)),
                pl.BlockSpec((c_out, 1), lambda n: (0, 0)),
            ],
            out_specs=pl.BlockSpec((1, c_out, Lp), lambda n: (n, 0, 0)),
            scratch_shapes=[pltpu.VMEM((K * K * c_in, Lp), jnp.bfloat16)],
        ),
        compiler_params=pltpu.CompilerParams(
            dimension_semantics=("parallel",),
            allow_input_fusion=[True, False, False],
        ),
        cost_estimate=cost,
    )(xf, w_stack, b_col)

    # (N, Cout, Lp): crop the dense stride-1 result and apply stride.
    # Already NCHW — no transposes anywhere in the wrapper.
    out = out[:, :, :L].reshape(N, c_out, H_full, Wp)
    out = out[:, :, ::s, 0:W_full:s]
    return out


# --------------------------------------------------------------------------
# Main
# --------------------------------------------------------------------------
if __name__ == "__main__":
    # module config
    in_channels, out_channels = 4, 8
    kernel_size, stride, dilation = 3, 1, 1
    use_bias, use_sn = True, True

    key = jax.random.PRNGKey(0)
    kx, kw, kb, ku = jax.random.split(key, 4)

    x = jax.random.normal(kx, (2, in_channels, 16, 16), dtype=jnp.float32)
    weight = 0.1 * jax.random.normal(
        kw, (out_channels, in_channels, kernel_size, kernel_size),
        dtype=jnp.float32)
    bias = 0.1 * jax.random.normal(kb, (out_channels,), dtype=jnp.float32)
    u = jax.random.normal(ku, (out_channels,), dtype=jnp.float32)
    u = u / (jnp.linalg.norm(u) + 1e-12)

    fwd = jax.jit(functools.partial(
        sn_conv_forward,
        kernel_size=kernel_size, stride=stride, dilation=dilation,
        use_bias=use_bias, use_sn=use_sn))

    out = jax.block_until_ready(fwd(x, weight, bias, u))

    # Reference: same bf16-rounded operands, full-precision f32 conv, so the
    # only difference vs the Pallas path is accumulation order.
    pad = (kernel_size + (kernel_size - 1) * (dilation - 1) - 1) // 2
    w_sn = _spectral_normalize(weight, u)
    x_pad = _reflection_pad_nchw(x, pad)
    x_bf = x_pad.astype(jnp.bfloat16).astype(jnp.float32)
    w_bf = w_sn.astype(jnp.bfloat16).astype(jnp.float32)
    ref = jax.lax.conv_general_dilated(
        x_bf, w_bf, window_strides=(stride, stride), padding="VALID",
        rhs_dilation=(dilation, dilation),
        dimension_numbers=("NCHW", "OIHW", "NCHW"),
        precision=jax.lax.Precision.HIGHEST)
    ref = ref + bias.reshape(1, -1, 1, 1)

    assert out.shape == (2, out_channels, 16, 16), out.shape
    max_err = float(jnp.max(jnp.abs(out - ref)))
    assert jnp.allclose(out, ref, atol=2e-3, rtol=2e-3), max_err

    print("KERNEL_OK")
</pallas_src>

<mosaic_0001>
module attributes {stable_mosaic.version = 11 : i64} {
  func.func @kernel(%arg0: i32, %arg1: memref<1x4x512xbf16, #tpu.memory_space<vmem>>, %arg2: memref<8x36xbf16, #tpu.memory_space<vmem>>, %arg3: memref<8x1xf32, #tpu.memory_space<vmem>>, %arg4: memref<1x8x384xf32, #tpu.memory_space<vmem>>, %arg5: memref<36x384xbf16, #tpu.memory_space<vmem>>) attributes {dimension_semantics = [#tpu.dimension_semantics<parallel>], iteration_bounds = array<i64: 2>, scalar_prefetch = 0 : i64, scratch_operands = 1 : i64, tpu.core_type = #tpu.core_type<tc>, window_params = [{transform_indices = @transform_0, window_bounds = array<i64: 1, 4, 512>}, {pipeline_mode = #tpu.pipeline_mode<synchronous>, transform_indices = @transform_1, window_bounds = array<i64: 8, 36>}, {pipeline_mode = #tpu.pipeline_mode<synchronous>, transform_indices = @transform_2, window_bounds = array<i64: 8, 1>}, {transform_indices = @transform_3, window_bounds = array<i64: 1, 8, 384>}]} {
    %c0 = arith.constant 0 : index
    %c0_0 = arith.constant 0 : index
    %c0_1 = arith.constant 0 : index
    %0 = vector.load %arg1[%c0, %c0_0, %c0_1] : memref<1x4x512xbf16, #tpu.memory_space<vmem>>, vector<1x4x384xbf16>
    %1 = vector.shape_cast %0 : vector<1x4x384xbf16> to vector<4x384xbf16>
    %c0_2 = arith.constant 0 : index
    %c0_3 = arith.constant 0 : index
    %2 = vector.load %arg5[%c0_2, %c0_3] : memref<36x384xbf16, #tpu.memory_space<vmem>>, vector<4x384xbf16>
    tpu.vector_store %arg5[%c0_2, %c0_3], %1 {strides = array<i32>} : memref<36x384xbf16, #tpu.memory_space<vmem>>, vector<4x384xbf16>,
    %c0_4 = arith.constant 0 : index
    %c0_5 = arith.constant 0 : index
    %c1 = arith.constant 1 : index
    %3 = vector.load %arg1[%c0_4, %c0_5, %c1] : memref<1x4x512xbf16, #tpu.memory_space<vmem>>, vector<1x4x384xbf16>
    %4 = vector.shape_cast %3 : vector<1x4x384xbf16> to vector<4x384xbf16>
    %c4 = arith.constant 4 : index
    %c0_6 = arith.constant 0 : index
    %5 = vector.load %arg5[%c4, %c0_6] : memref<36x384xbf16, #tpu.memory_space<vmem>>, vector<4x384xbf16>
    tpu.vector_store %arg5[%c4, %c0_6], %4 {strides = array<i32>} : memref<36x384xbf16, #tpu.memory_space<vmem>>, vector<4x384xbf16>,
    %c0_7 = arith.constant 0 : index
    %c0_8 = arith.constant 0 : index
    %c2 = arith.constant 2 : index
    %6 = vector.load %arg1[%c0_7, %c0_8, %c2] : memref<1x4x512xbf16, #tpu.memory_space<vmem>>, vector<1x4x384xbf16>
    %7 = vector.shape_cast %6 : vector<1x4x384xbf16> to vector<4x384xbf16>
    %c8 = arith.constant 8 : index
    %c0_9 = arith.constant 0 : index
    %8 = vector.load %arg5[%c8, %c0_9] : memref<36x384xbf16, #tpu.memory_space<vmem>>, vector<4x384xbf16>
    tpu.vector_store %arg5[%c8, %c0_9], %7 {strides = array<i32>} : memref<36x384xbf16, #tpu.memory_space<vmem>>, vector<4x384xbf16>,
    %c0_10 = arith.constant 0 : index
    %c0_11 = arith.constant 0 : index
    %c18 = arith.constant 18 : index
    %9 = vector.load %arg1[%c0_10, %c0_11, %c18] : memref<1x4x512xbf16, #tpu.memory_space<vmem>>, vector<1x4x384xbf16>
    %10 = vector.shape_cast %9 : vector<1x4x384xbf16> to vector<4x384xbf16>
    %c12 = arith.constant 12 : index
    %c0_12 = arith.constant 0 : index
    %11 = vector.load %arg5[%c12, %c0_12] : memref<36x384xbf16, #tpu.memory_space<vmem>>, vector<4x384xbf16>
    tpu.vector_store %arg5[%c12, %c0_12], %10 {strides = array<i32>} : memref<36x384xbf16, #tpu.memory_space<vmem>>, vector<4x384xbf16>,
    %c0_13 = arith.constant 0 : index
    %c0_14 = arith.constant 0 : index
    %c19 = arith.constant 19 : index
    %12 = vector.load %arg1[%c0_13, %c0_14, %c19] : memref<1x4x512xbf16, #tpu.memory_space<vmem>>, vector<1x4x384xbf16>
    %13 = vector.shape_cast %12 : vector<1x4x384xbf16> to vector<4x384xbf16>
    %c16 = arith.constant 16 : index
    %c0_15 = arith.constant 0 : index
    %14 = vector.load %arg5[%c16, %c0_15] : memref<36x384xbf16, #tpu.memory_space<vmem>>, vector<4x384xbf16>
    tpu.vector_store %arg5[%c16, %c0_15], %13 {strides = array<i32>} : memref<36x384xbf16, #tpu.memory_space<vmem>>, vector<4x384xbf16>,
    %c0_16 = arith.constant 0 : index
    %c0_17 = arith.constant 0 : index
    %c20 = arith.constant 20 : index
    %15 = vector.load %arg1[%c0_16, %c0_17, %c20] : memref<1x4x512xbf16, #tpu.memory_space<vmem>>, vector<1x4x384xbf16>
    %16 = vector.shape_cast %15 : vector<1x4x384xbf16> to vector<4x384xbf16>
    %c20_18 = arith.constant 20 : index
    %c0_19 = arith.constant 0 : index
    %17 = vector.load %arg5[%c20_18, %c0_19] : memref<36x384xbf16, #tpu.memory_space<vmem>>, vector<4x384xbf16>
    tpu.vector_store %arg5[%c20_18, %c0_19], %16 {strides = array<i32>} : memref<36x384xbf16, #tpu.memory_space<vmem>>, vector<4x384xbf16>,
    %c0_20 = arith.constant 0 : index
    %c0_21 = arith.constant 0 : index
    %c36 = arith.constant 36 : index
    %18 = vector.load %arg1[%c0_20, %c0_21, %c36] : memref<1x4x512xbf16, #tpu.memory_space<vmem>>, vector<1x4x384xbf16>
    %19 = vector.shape_cast %18 : vector<1x4x384xbf16> to vector<4x384xbf16>
    %c24 = arith.constant 24 : index
    %c0_22 = arith.constant 0 : index
    %20 = vector.load %arg5[%c24, %c0_22] : memref<36x384xbf16, #tpu.memory_space<vmem>>, vector<4x384xbf16>
    tpu.vector_store %arg5[%c24, %c0_22], %19 {strides = array<i32>} : memref<36x384xbf16, #tpu.memory_space<vmem>>, vector<4x384xbf16>,
    %c0_23 = arith.constant 0 : index
    %c0_24 = arith.constant 0 : index
    %c37 = arith.constant 37 : index
    %21 = vector.load %arg1[%c0_23, %c0_24, %c37] : memref<1x4x512xbf16, #tpu.memory_space<vmem>>, vector<1x4x384xbf16>
    %22 = vector.shape_cast %21 : vector<1x4x384xbf16> to vector<4x384xbf16>
    %c28 = arith.constant 28 : index
    %c0_25 = arith.constant 0 : index
    %23 = vector.load %arg5[%c28, %c0_25] : memref<36x384xbf16, #tpu.memory_space<vmem>>, vector<4x384xbf16>
    tpu.vector_store %arg5[%c28, %c0_25], %22 {strides = array<i32>} : memref<36x384xbf16, #tpu.memory_space<vmem>>, vector<4x384xbf16>,
    %c0_26 = arith.constant 0 : index
    %c0_27 = arith.constant 0 : index
    %c38 = arith.constant 38 : index
    %24 = vector.load %arg1[%c0_26, %c0_27, %c38] : memref<1x4x512xbf16, #tpu.memory_space<vmem>>, vector<1x4x384xbf16>
    %25 = vector.shape_cast %24 : vector<1x4x384xbf16> to vector<4x384xbf16>
    %c32 = arith.constant 32 : index
    %c0_28 = arith.constant 0 : index
    %26 = vector.load %arg5[%c32, %c0_28] : memref<36x384xbf16, #tpu.memory_space<vmem>>, vector<4x384xbf16>
    tpu.vector_store %arg5[%c32, %c0_28], %25 {strides = array<i32>} : memref<36x384xbf16, #tpu.memory_space<vmem>>, vector<4x384xbf16>,
    %c0_29 = arith.constant 0 : index
    %c0_30 = arith.constant 0 : index
    %27 = vector.load %arg2[%c0_29, %c0_30] : memref<8x36xbf16, #tpu.memory_space<vmem>>, vector<8x36xbf16>
    %c0_31 = arith.constant 0 : index
    %c0_32 = arith.constant 0 : index
    %28 = vector.load %arg5[%c0_31, %c0_32] : memref<36x384xbf16, #tpu.memory_space<vmem>>, vector<36x384xbf16>
    %cst = arith.constant dense<0.000000e+00> : vector<8x384xf32>
    %29 = tpu.matmul %27, %28, %cst {dimension_numbers = #tpu.dot_dimension_numbers<[1], [0], [0], [1], [0, 0, 1, 1], [], []>} : vector<8x36xbf16>, vector<36x384xbf16>, vector<8x384xf32> -> vector<8x384xf32>
    %c0_33 = arith.constant 0 : index
    %c0_34 = arith.constant 0 : index
    %30 = vector.load %arg3[%c0_33, %c0_34] : memref<8x1xf32, #tpu.memory_space<vmem>>, vector<8x1xf32>
    %31 = vector.broadcast %30 : vector<8x1xf32> to vector<8x384xf32>
    %32 = arith.addf %29, %31 : vector<8x384xf32>
    %c0_35 = arith.constant 0 : index
    %c0_36 = arith.constant 0 : index
    %c0_37 = arith.constant 0 : index
    %33 = vector.load %arg4[%c0_35, %c0_36, %c0_37] : memref<1x8x384xf32, #tpu.memory_space<vmem>>, vector<1x8x384xf32>
    %34 = vector.shape_cast %33 : vector<1x8x384xf32> to vector<8x384xf32>
    %35 = vector.shape_cast %32 : vector<8x384xf32> to vector<1x8x384xf32>
    tpu.vector_store %arg4[%c0_35, %c0_36, %c0_37], %35 {strides = array<i32>} : memref<1x8x384xf32, #tpu.memory_space<vmem>>, vector<1x8x384xf32>,
    return
  }
  func.func @transform_0(%arg0: i32) -> (i32, i32, i32) {
    %c0_i32 = arith.constant 0 : i32
    %c0_i32_0 = arith.constant 0 : i32
    %c0_i32_1 = arith.constant 0 : i32
    return %arg0, %c0_i32, %c0_i32_0 : i32, i32, i32
  }
  func.func @transform_1(%arg0: i32) -> (i32, i32) {
    %c0_i32 = arith.constant 0 : i32
    %c0_i32_0 = arith.constant 0 : i32
    %c0_i32_1 = arith.constant 0 : i32
    return %c0_i32, %c0_i32_0 : i32, i32
  }
  func.func @transform_2(%arg0: i32) -> (i32, i32) {
    %c0_i32 = arith.constant 0 : i32
    %c0_i32_0 = arith.constant 0 : i32
    %c0_i32_1 = arith.constant 0 : i32
    return %c0_i32, %c0_i32_0 : i32, i32
  }
  func.func @transform_3(%arg0: i32) -> (i32, i32, i32) {
    %c0_i32 = arith.constant 0 : i32
    %c0_i32_0 = arith.constant 0 : i32
    %c0_i32_1 = arith.constant 0 : i32
    return %arg0, %c0_i32, %c0_i32_0 : i32, i32, i32
  }
}

</mosaic_0001>

<bundles_post_ra>
// kernel: sn_conv_forward.2
= control target key start
LH: loop header
LB: loop body
LE: loop exit
PB: predicated region body
PF: predicated region fallthrough
CT: control target
= control target key end

     0   :  { %s718_s17 = smov 0   ;;  %s796_s0 = inlined_call_operand.vmem [shape: bf16[8,36], index: 0, kind: input, shape index: {}]   ;;  %s797_s1 = inlined_call_operand.vmem [shape: f32[8,1], index: 1, kind: input, shape index: {}]   ;;  %s798_s2 = inlined_call_operand.vmem [shape: bf16[2,4,324], index: 2, kind: input, shape index: {}]   ;;  %s799_s3 = inlined_call_operand.<no memory space> [shape: bf16[], index: 3, kind: input, shape index: {}]   ;;  %s800_s4 = inlined_call_operand.vmem [shape: f32[2,8,384], index: 4, kind: output, shape index: {}]  }
   0x1   :  { %v9_v0 = vstv %s799_s3 }
   0x2   :  { %v716_v1 = vunpack.i.l.bf16 %v9_v0 }
   0x3 LB: > { %s606_s18 = sadd.s32 4294967295, %s677_s17   ;;  %p610_p0 = scmp.ge.s32.totalorder %s677_s17, 1  ;;  %s677_s17 = sphi %s718_s17, %s19_s17  }
   0x4   : > { %p143_p1 = scmp.lt.s32.totalorder %s677_s17, 3 }
   0x6   : > { %p144_p2 = pnand %p610_p0, %p143_p1 }
   0x8   : > { %147 = sbr.rel (%p144_p2) target bundleno = 397 (0x18d), region = 32 }
   0xd   : > { %p167_p3 = scmp.lt.s32.totalorder %s606_s18, 1  ;;  %v186_v2 = vlaneseq  ;;  %v251_v3 = vpack.c.bf16 0.0, %v716_v1  ;;  %s679_s22 = smov 127   ;;  %vm324_vm2 = vcmask 900096   ;;  %vm281_vm3 = vcmask 1039360  }
   0xe   : > { %s680_s23 = smov 126   ;;  %s681_s24 = smov 110   ;;  %vm302_vm4 = vcmask 1031168   ;;  %vm388_vm5 = vcmask 752640   ;;  %vm410_vm6 = vcmask 744448   ;;  %vm279_vm7 = vcmask 1043456  }
   0xf   : > { %s802_s18 = smov (!%p167_p3, %s606_s18), 1  ;;  %v187_v4 = vshrl.u32 %v186_v2, 7  ;;  %v241_v5 = vand.u32 127, %v186_v2  ;;  %254 = vst [vmem:[#allocation8 + $0x6] sm:$0x3] %v251_v3  ;;  %s682_s25 = smov 109  }
  0x10   : > { %s650_s3 = smul.u32 6, %s802_s18  ;;  %s683_s26 = smov 108   ;;  %vm345_vm8 = vcmask 891904   ;;  %vm367_vm9 = vcmask 883712   ;;  %vm431_vm10 = vcmask 736256   ;;  %vm499_vm11 = vcmask 1041408  }
  0x11   : > { %v242_v6 = vadd.s32 256, %v241_v5  ;;  %vm189_vm0 = vcmp.lt.s32.totalorder %v187_v4, 4  ;;  %s684_s27 = smov 92   ;;  %s685_s28 = smov 91   ;;  %vm495_vm12 = vcmask 293888  }
  0x12   : > { %s171_s21 = scalar_lea.vmem %s798_s2, %s650_s3  ;;  %s686_s29 = smov 90  }
  0x13   : > { %v183_v7 = vld [vmem:[%s171_s21] sm:$0x3]  ;;  %v613_v8 = vld [vmem:[%s171_s21 + $0x2] sm:$0x3]  ;;  %v614_v9 = vld [vmem:[%s171_s21 + $0x4] sm:$0x3] }
  0x14   : > { %v184_v10 = vunpack.c.l.bf16 %v183_v7  ;;  %v208_v11 = vunpack.c.l.bf16 %v613_v8  ;;  %v233_v12 = vunpack.c.l.bf16 %v614_v9  ;;  %vm243_vm1 = vcmp.lt.s32.totalorder %v242_v6, 324  ;;  %s651_s8 = smul.u32 24, %s802_s18 }
  0x16   : > { %v190_v13 = vsel %vm189_vm0, %v184_v10, %v716_v1  ;;  %v214_v14 = vsel %vm189_vm0, %v208_v11, %v716_v1  ;;  %v239_v15 = vsel %vm189_vm0, %v233_v12, %v716_v1  ;;  %s176_s11 = scalar_lea.vmem %s800_s4, %s651_s8 }
  0x17   : > { %v196_v16 = vpack.c.bf16 0.0, %v190_v13  ;;  %v221_v17 = vpack.c.bf16 0.0, %v214_v14  ;;  %v244_v18 = vsel %vm243_vm1, %v239_v15, %v716_v1 }
  0x18   : > { %v246_v19 = vpack.c.bf16 0.0, %v244_v18 }
  0x19   : > { %199 = vst [vmem:[#allocation8] sm:$0x3] %v196_v16 }
  0x1a   : > { %224 = vst [vmem:[#allocation8 + $0x2] sm:$0x3] %v221_v17 }
  0x1b   : > { %249 = vst [vmem:[#allocation8 + $0x4] sm:$0x3] %v246_v19 }
  0x22   : > { %v256_v20 = vld [vmem:[#allocation8] sm:$0x3f] }
  0x23   : > { %258 = vst [vmem:[#allocation1] ss:$2 sm:$0xff] %v256_v20  ;;  %v265_v21 = vld [vmem:[#allocation8] sm:$0xff] }
  0x2a   : > { %v259_v22 = vld.sshfl [vmem:[#allocation1] sm:$0xff pattern:$0x75643120]  ;;  %v260_v23 = vld.sshfl [vmem:[#allocation1 + $0x8] sm:$0xff pattern:$0x75643120] }
  0x2b   : > { %268 = vst [vmem:[#allocation1 + $0x1] ss:$2 sm:$0xff] %v265_v21 }
  0x2c   : > { %263 = vst [vmem:[#allocation2] sm:$0x33] %v259_v22 }
  0x2d   : > { %264 = vst [vmem:[#allocation2 + $0x8] sm:$0x3] %v260_v23  ;;  %v449_v23 = vld [vmem:[%s797_s1] sm:$0xff] }
  0x32   : > { %v269_v24 = vld.sshfl [vmem:[#allocation1] sm:$0xff pattern:$0x75643120]  ;;  %v271_v25 = vld.sshfl [vmem:[#allocation1 + $0x8] sm:$0xff pattern:$0x75643120] }
  0x33   : > { %290 = vst [vmem:[#allocation1] ss:$2 sm:$0xff] %v265_v21  ;;  %275 = vrot.lane.b32.xlu0 %v271_v25, %s679_s22 }
  0x3a   : > { %v293_v26 = vld.sshfl [vmem:[#allocation1 + $0x8] sm:$0xff pattern:$0x75643120]  ;;  %v291_v27 = vld.sshfl [vmem:[#allocation1] sm:$0xff pattern:$0x75643120] }
  0x3b   : > { %297 = vrot.lane.b32.xlu1 %v293_v26, %s680_s23  ;;  %312 = vst [vmem:[#allocation1 + $0x1] ss:$2 sm:$0xff] %v265_v21  ;;  %v687_v26 = vmov 0  }
  0x3c   : > { %669 = vset.pattern.permute.xlu1 %v687_v26  ;;  %670 = vset.pattern.permute.xlu0 %v687_v26 }
  0x42   : > { %v313_v28 = vld.sshfl [vmem:[#allocation1] sm:$0xff pattern:$0x75643120]  ;;  %v315_v29 = vld.sshfl [vmem:[#allocation1 + $0x8] sm:$0xff pattern:$0x75643120] }
  0x43   : > { %333 = vst [vmem:[#allocation1] ss:$2 sm:$0xff] %v265_v21  ;;  %319 = vrot.lane.b32.xlu2 %v315_v29, %s681_s24 }
  0x4a   : > { %v334_v30 = vld.sshfl [vmem:[#allocation1] sm:$0xff pattern:$0x75643120]  ;;  %v336_v31 = vld.sshfl [vmem:[#allocation1 + $0x8] sm:$0xff pattern:$0x75643120] }
  0x4b   : > { %340 = vrot.lane.b32.xlu1 %v336_v31, %s682_s25  ;;  %355 = vst [vmem:[#allocation1 + $0x1] ss:$2 sm:$0xff] %v265_v21  ;;  %338 = vrot.lane.b32.xlu0 %v334_v30, %s682_s25 }
  0x52   : > { %v358_v32 = vld.sshfl [vmem:[#allocation1 + $0x8] sm:$0xff pattern:$0x75643120]  ;;  %v356_v33 = vld.sshfl [vmem:[#allocation1] sm:$0xff pattern:$0x75643120] }
  0x53   : > { %362 = vrot.lane.b32.xlu1 %v358_v32, %s683_s26  ;;  %376 = vst [vmem:[#allocation1] ss:$2 sm:$0xff] %v265_v21 }
  0x5a   : > { %v379_v34 = vld.sshfl [vmem:[#allocation1 + $0x8] sm:$0xff pattern:$0x75643120]  ;;  %v377_v35 = vld.sshfl [vmem:[#allocation1] sm:$0xff pattern:$0x75643120] }
  0x5b   : > { %360 = vrot.lane.b32.xlu1 %v356_v33, %s683_s26  ;;  %383 = vrot.lane.b32.xlu2 %v379_v34, %s684_s27  ;;  %398 = vst [vmem:[#allocation1 + $0x1] ss:$2 sm:$0xff] %v265_v21 }
  0x62   : > { %v401_v36 = vld.sshfl [vmem:[#allocation1 + $0x8] sm:$0xff pattern:$0x75643120]  ;;  %v399_v37 = vld.sshfl [vmem:[#allocation1] sm:$0xff pattern:$0x75643120] }
  0x63   : > { %273 = vrot.lane.b32.xlu1 %v269_v24, %s679_s22  ;;  %405 = vrot.lane.b32.xlu2 %v401_v36, %s685_s28  ;;  %419 = vst [vmem:[#allocation1] ss:$2 sm:$0xff] %v265_v21 }
  0x6a   : > { %v422_v38 = vld.sshfl [vmem:[#allocation1 + $0x8] sm:$0xff pattern:$0x75643120]  ;;  %v420_v39 = vld.sshfl [vmem:[#allocation1] sm:$0xff pattern:$0x75643120] }
  0x6b   : > { %426 = vrot.lane.b32.xlu0 %v422_v38, %s686_s29  ;;  %381 = vrot.lane.b32.xlu2 %v377_v35, %s684_s27 }
  0x6c   : > { %452 = vperm.xlu1 %669, %v449_v23  }
  0x73   : > { %424 = vrot.lane.b32.xlu0 %v420_v39, %s686_s29  ;;  %295 = vrot.lane.b32.xlu2 %v291_v27, %s680_s23 }
  0x7b   : > { %403 = vrot.lane.b32.xlu0 %v399_v37, %s685_s28 }
  0x83   : > { %317 = vrot.lane.b32.xlu0 %v313_v28, %s681_s24 }
  0x9d   : > { %v743_v40 = vpop.permute.xlu2 %319 }
  0x9e   : > { %v322_v41 = vrot.slane %v743_v40, 4 }
  0xa0   : > { %v326_v42 = vsel %vm324_vm2, %v743_v40, %v322_v41 }
  0xa1   : > { %330 = vst [vmem:[#allocation2 + $0x14] sm:$0xc] %v326_v42 }
  0xa5   : > { %v276_v43 = vpop.permute.xlu0 %275 }
  0xa6   : > { %v278_v44 = vrot.slane %v276_v43, 4 }
  0xa8   : > { %v283_v45 = vsel %vm281_vm3, %v276_v43, %v278_v44 }
  0xa9   : > { %287 = vst [vmem:[#allocation2 + $0x8] sm:$0xc] %v283_v45 }
  0xad   : > { %v298_v46 = vpop.permute.xlu1 %297 }
  0xae   : > { %v300_v47 = vrot.slane %v298_v46, 4 }
  0xb0   : > { %v304_v48 = vsel %vm302_vm4, %v298_v46, %v300_v47  ;;  %v625_v38 = vld [vmem:[#allocation2 + $0x8] sm:$0xf] }
  0xb1   : > { %308 = vst [vmem:[#allocation2 + $0x14] sm:$0x3] %v304_v48 }
  0xb5   : > { %v384_v49 = vpop.permute.xlu2 %383 }
  0xb6   : > { %v386_v50 = vrot.slane %v384_v49, 4 }
  0xb8   : > { %v390_v51 = vsel %vm388_vm5, %v384_v49, %v386_v50  ;;  %v646_v39 = vld [vmem:[#allocation2 + $0x10] sm:$0xf0] }
  0xb9   : > { %394 = vst [vmem:[#allocation2 + $0x2c] sm:$0x3] %v390_v51  ;;  %v626_v45 = vor.u32 %v646_v39, %v625_v38 }
  0xbd   : > { %v341_v52 = vpop.permute.xlu1 %340  ;;  %v753_v53 = vpop.permute.xlu2 %405 }
  0xbe   : > { %v343_v54 = vrot.slane %v341_v52, 4  ;;  %v408_v55 = vrot.slane %v753_v53, 4  ;;  %v339_v56 = vpop.permute.xlu0 %338 }
  0xbf   : > { %v342_v57 = vrot.slane %v339_v56, 4 }
  0xc0   : > { %v347_v58 = vsel %vm345_vm8, %v341_v52, %v343_v54  ;;  %v412_v59 = vsel %vm410_vm6, %v753_v53, %v408_v55  ;;  %v438_v52 = vld [vmem:[%s796_s0] sm:$0xf] }
  0xc1   : > { %351 = vst [vmem:[#allocation2 + $0x20] sm:$0x3] %v347_v58  ;;  %v344_v60 = vsel %vm279_vm7, %v342_v57, %v343_v54 }
  0xc2   : > { %416 = vst [vmem:[#allocation2 + $0x2c] sm:$0xc] %v412_v59  ;;  %v346_v61 = vsel %vm345_vm8, %v339_v56, %v344_v60 }
  0xc3   : > { %350 = vst [vmem:[#allocation2 + $0x18] sm:$0x33] %v346_v61 }
  0xc5   : > { %v363_v62 = vpop.permute.xlu1 %362  ;;  %v382_v63 = vpop.permute.xlu2 %381 }
  0xc6   : > { %v365_v0 = vrot.slane %v363_v62, 4  ;;  %v385_v2 = vrot.slane %v382_v63, 4 }
  0xc8   : > { %v369_v3 = vsel %vm367_vm9, %v363_v62, %v365_v0  ;;  %v387_v4 = vsel %vm279_vm7, %v385_v2, %v386_v50 }
  0xc9   : > { %373 = vst [vmem:[#allocation2 + $0x20] sm:$0xc] %v369_v3  ;;  %v389_v5 = vsel %vm388_vm5, %v382_v63, %v387_v4  ;;  %v649_v33 = vld [vmem:[#allocation2 + $0x28] sm:$0xf0] }
  0xca   : > { %393 = vst [vmem:[#allocation2 + $0x24] sm:$0x33] %v389_v5 }
  0xcd   : > { %v361_v6 = vpop.permute.xlu1 %360  ;;  %v296_v7 = vpop.permute.xlu2 %295 }
  0xce   : > { %v364_v8 = vrot.slane %v361_v6, 4  ;;  %v299_v9 = vrot.slane %v296_v7, 4 }
  0xd0   : > { %v366_v10 = vsel %vm279_vm7, %v364_v8, %v365_v0  ;;  %v301_v11 = vsel %vm279_vm7, %v299_v9, %v300_v47  ;;  %v637_v32 = vld [vmem:[#allocation2 + $0x20] sm:$0xf] }
  0xd1   : > { %v368_v12 = vsel %vm367_vm9, %v361_v6, %v366_v10  ;;  %v303_v13 = vsel %vm302_vm4, %v296_v7, %v301_v11  ;;  %v638_v36 = vor.u32 %v649_v33, %v637_v32 }
  0xd2   : > { %372 = vst [vmem:[#allocation2 + $0x18] sm:$0xcc] %v368_v12 }
  0xd3   : > { %307 = vst [vmem:[#allocation2 + $0xc] sm:$0x33] %v303_v13 }
  0xd5   : > { %v274_v14 = vpop.permute.xlu1 %273 }
  0xd6   : > { %v277_v15 = vrot.slane %v274_v14, 4 }
  0xd8   : > { %v280_v16 = vsel %vm279_vm7, %v277_v15, %v278_v44 }
  0xd9   : > { %v282_v17 = vsel %vm281_vm3, %v274_v14, %v280_v16  ;;  %v629_v54 = vld [vmem:[#allocation2 + $0x18] sm:$0xf]  ;;  %v647_v57 = vld [vmem:[#allocation2 + $0x1c] sm:$0xf] }
  0xda   : > { %286 = vst [vmem:[#allocation2] sm:$0xcc] %v282_v17 }
  0xdd   : > { %v427_v18 = vpop.permute.xlu0 %426 }
  0xde   : > { %v429_v19 = vrot.slane %v427_v18, 4  ;;  %v453_v2 = vpop.permute.xlu1 %452 }
  0xe0   : > { %v433_v20 = vsel %vm431_vm10, %v427_v18, %v429_v19 }
  0xe1   : > { %437 = vst [vmem:[#allocation2 + $0x38] sm:$0x3] %v433_v20  ;;  %v617_v61 = vld [vmem:[#allocation2] sm:$0xf]  ;;  %v644_v63 = vld [vmem:[#allocation2 + $0x4] sm:$0xf] }
  0xe5   : > { %v425_v21 = vpop.permute.xlu0 %424 }
  0xe6   : > { %v428_v22 = vrot.slane %v425_v21, 4 }
  0xe8   : > { %v430_v24 = vsel %vm279_vm7, %v428_v22, %v429_v19  ;;  %v448_v25 = vld [vmem:[#allocation2 + $0x38] sm:$0x3] }
  0xe9   : > { %v432_v27 = vsel %vm431_vm10, %v425_v21, %v430_v24  ;;  %v479_v28 = vunpack.c.l.b16 %v448_v25 }
  0xea   : > { %436 = vst [vmem:[#allocation2 + $0x30] sm:$0x33] %v432_v27 }
  0xeb   : > { %v488_v29 = vpack.c.b16 %v479_v28, %v479_v28 }
  0xed   : > { %v404_v30 = vpop.permute.xlu0 %403  ;;  %v507_v31 = vsel %vm499_vm11, %v488_v29, 0 }
  0xee   : > { %v407_v34 = vrot.slane %v404_v30, 4  ;;  %540 = vmatpush.bf16.msra.mxu2 %v507_v31 }
  0xf0   : > { %v409_v35 = vsel %vm279_vm7, %v407_v34, %v408_v55 }
  0xf1   : > { %v411_v37 = vsel %vm410_vm6, %v404_v30, %v409_v35  ;;  %v447_v42 = vld [vmem:[#allocation2 + $0x30] sm:$0x33] }
  0xf2   : > { %415 = vst [vmem:[#allocation2 + $0x24] sm:$0xcc] %v411_v37  ;;  %541 = vmatpush.bf16.msra.mxu2 %v638_v36  ;;  %v477_v43 = vunpack.c.l.b16 %v447_v42  ;;  %v478_v44 = vunpack.c.h.b16 %v447_v42 }
  0xf4   : > { %v486_v46 = vpack.c.b16 %v477_v43, %v477_v43  ;;  %v487_v47 = vpack.c.b16 %v478_v44, %v478_v44 }
  0xf5   : > { %v318_v48 = vpop.permute.xlu0 %317 }
  0xf6   : > { %v321_v49 = vrot.slane %v318_v48, 4  ;;  %542 = vmatpush.bf16.msra.mxu2 %v626_v45  ;;  %v501_v50 = vsel %vm499_vm11, %v486_v46, 0  ;;  %v504_v51 = vsel %vm499_vm11, %v487_v47, 0 }
  0xf7   : > { %514 = vmatpush.bf16.msra.mxu0 %v501_v50  ;;  %527 = vmatpush.bf16.msra.mxu1 %v504_v51 }
  0xf8   : > { %v323_v53 = vsel %vm279_vm7, %v321_v49, %v322_v41 }
  0xf9   : > { %v325_v55 = vsel %vm324_vm2, %v318_v48, %v323_v53  ;;  %641 = vmatmul.msk.bf16.vlgmr.msra.gmra.mxu2 %vm495_vm12, %v438_v52  ;;  %v648_v56 = vld [vmem:[#allocation2 + $0x20] sm:$0xf0]  ;;  %v631_v58 = vld [vmem:[#allocation2 + $0x24] sm:$0xf0] }
  0xfa   : > { %329 = vst [vmem:[#allocation2 + $0xc] sm:$0xcc] %v325_v55  ;;  %v630_v59 = vor.u32 %v648_v56, %v629_v54  ;;  %v634_v60 = vor.u32 %v647_v57, %v631_v58 }
  0xfc   : > { %515 = vmatpush.bf16.msra.mxu0 %v630_v59  ;;  %528 = vmatpush.bf16.msra.mxu1 %v634_v60 }
 0x101   : > { %v645_v62 = vld [vmem:[#allocation2 + $0x8] sm:$0xf0]  ;;  %v619_v40 = vld [vmem:[#allocation2 + $0xc] sm:$0xf0] }
 0x102   : > { %v618_v0 = vor.u32 %v645_v62, %v617_v61  ;;  %v622_v41 = vor.u32 %v644_v63, %v619_v40 }
 0x104   : > { %516 = vmatpush.bf16.msra.mxu0 %v618_v0  ;;  %529 = vmatpush.bf16.msra.mxu1 %v622_v41 }
 0x107   : > { %639 = vmatmul.msk.bf16.vlgmr.msra.gmra.mxu0 %vm495_vm12, %v438_v52  ;;  %640 = vmatmul.msk.bf16.vlgmr.msra.gmra.mxu1 %vm495_vm12, %v438_v52 }
 0x17c   : > { %v544_v3 = vpop.f32.mrf.mxu2 }
 0x17d   : > { %v545_v4 = vadd.f32 %v544_v3, %v453_v2 }
 0x17f   : > { %550 = vst [vmem:[%s176_s11 + $0x10] sm:$0xff] %v545_v4 }
 0x184   : > { %v518_v5 = vpop.f32.mrf.mxu0  ;;  %v531_v6 = vpop.f32.mrf.mxu1 }
 0x185   : > { %v519_v7 = vadd.f32 %v518_v5, %v453_v2  ;;  %v532_v8 = vadd.f32 %v531_v6, %v453_v2  ;;  %v546_v9 = vpop.f32.mrf.mxu2 }
 0x187   : > { %548 = vst [vmem:[%s176_s11] sm:$0xff] %v519_v7 }
 0x188   : > { %549 = vst [vmem:[%s176_s11 + $0x8] sm:$0xff] %v532_v8 }
 0x18c   : > { %v520_v10 = vpop.f32.mrf.mxu0  ;;  %v533_v11 = vpop.f32.mrf.mxu1 }
 0x18d PF: > { %s19_s17 = sadd.s32 1, %s677_s17  }
 0x18e   : > { %p16_p4 = scmp.ge.s32.totalorder %s19_s17, 4  }
 0x190   :  { %18 = sbr.rel (!%p16_p4) target bundleno = 3 (0x3), region = 71 }

</bundles_post_ra>
